<compile_context>
chip_gen: v7x
topology: tpu7x:2x2x1
jax: 0.10.0
libtpu: 0.0.40
codegen_flags: <defaults>
</compile_context>

<pallas_src>
import functools

import jax
import jax.numpy as jnp
from jax import lax
from jax.experimental import pallas as pl
from jax.experimental.pallas import tpu as pltpu


def _oim_ce_kernel(x_ref, tgt_ref, lut_ref, queue_ref,     # inputs
                   loss_ref,                               # output
                   m_ref, l_ref, t_ref, xb_ref,            # scratch
                   *, temperature, num_pid, queue_size, tc, kl, kc_total):
    # x_ref:     (TN, D)  f32   reid features (row tile)
    # tgt_ref:   (TN, 1)  i32   targets (-1 / num_pid+1 rows are masked out)
    # lut_ref:   (TC, D)  f32   current lut class tile
    # queue_ref: (TC, D)  f32   current queue class tile
    # loss_ref:  (TN, 1)  f32   per-row masked CE (written on last class step)
    # m/l/t:     (TN, 1)  f32   running max / sum-exp / target-logit
    # xb_ref:    (TN, D)  bf16  temperature-scaled features, cached per row tile
    kc = pl.program_id(1)

    @pl.when(kc == 0)
    def _init():
        m_ref[...] = jnp.full_like(m_ref, -1e30)
        l_ref[...] = jnp.zeros_like(l_ref)
        t_ref[...] = jnp.zeros_like(t_ref)
        # Fold temperature into the small (TN, D) operand once per row tile.
        xb_ref[...] = (x_ref[...] * temperature).astype(jnp.bfloat16)

    tgt = tgt_ref[...]                                      # (TN, 1) i32

    def accumulate(w_tile_f32, base, seg_len, local_k):
        wb = w_tile_f32.astype(jnp.bfloat16)
        logits = lax.dot_general(xb_ref[...], wb, (((1,), (1,)), ((), ())),
                                 preferred_element_type=jnp.float32)  # (TN, TC)
        col_local = lax.broadcasted_iota(jnp.int32, logits.shape, 1)
        valid = col_local < (seg_len - local_k * tc)        # ragged last tile
        logits = jnp.where(valid, logits, -1e30)

        # Target logit via select-reduce (no one-hot f32 temporaries).
        col_global = base + local_k * tc + col_local
        hit = (col_global == tgt) & valid
        t_ref[...] += jnp.sum(jnp.where(hit, logits, 0.0), axis=-1, keepdims=True)

        # Online, numerically stable log-sum-exp update (f32).
        m_old = m_ref[...]
        m_new = jnp.maximum(m_old, jnp.max(logits, axis=-1, keepdims=True))
        l_ref[...] = (jnp.exp(m_old - m_new) * l_ref[...]
                      + jnp.sum(jnp.exp(logits - m_new), axis=-1, keepdims=True))
        m_ref[...] = m_new

    @pl.when(kc < kl)
    def _lut_phase():
        accumulate(lut_ref[...], 0, num_pid, kc)

    @pl.when(kc >= kl)
    def _queue_phase():
        accumulate(queue_ref[...], num_pid, queue_size, kc - kl)

    @pl.when(kc == kc_total - 1)
    def _finalize():
        # Row mask matches the PyTorch mask: target==num_pid is kept and
        # points at queue column 0 (first unlabeled column).
        row_mask = ((tgt >= 0) & (tgt <= num_pid)).astype(jnp.float32)
        lse = m_ref[...] + jnp.log(l_ref[...])
        loss_ref[...] = (lse - t_ref[...]) * row_mask


def oim_loss_forward(reid_feat, target, flags_, lut, queue, temperature):
    """Pallas implementation of OIMLoss.forward (default config)."""
    del flags_  # gt_flag only affects backward() lut updates, not the forward loss.
    n, d = reid_feat.shape
    num_pid = lut.shape[0]
    queue_size = queue.shape[0]
    assert num_pid >= 8 and queue_size >= 8, "see TODO(synk) about tiny lut/queue"

    # Row tile: whole batch if small, else 128-row tiles (partial last tile ok).
    tn = n if n <= 128 else 128
    n_row_tiles = pl.cdiv(n, tn)

    # Class tile: bounded by the smaller segment and a ~2 MiB-per-buffer VMEM
    # budget so double buffering of both segments (4 weight buffers) stays far
    # under the default scoped-VMEM limit on v5e/v6e/v7x.
    vmem_cap = max(8, ((2 * 1024 * 1024) // (4 * d)) // 8 * 8)
    tc = max(8, min(512, (min(num_pid, queue_size) // 8) * 8, vmem_cap))
    kl = pl.cdiv(num_pid, tc)
    kq = pl.cdiv(queue_size, tc)
    kc_total = kl + kq

    x = reid_feat.astype(jnp.float32)
    tgt = target.astype(jnp.int32).reshape(n, 1)

    kernel = functools.partial(
        _oim_ce_kernel, temperature=float(temperature), num_pid=num_pid,
        queue_size=queue_size, tc=tc, kl=kl, kc_total=kc_total)

    per_row = pl.pallas_call(
        kernel,
        out_shape=jax.ShapeDtypeStruct((n, 1), jnp.float32),
        grid_spec=pltpu.PrefetchScalarGridSpec(
            num_scalar_prefetch=0,
            grid=(n_row_tiles, kc_total),
            in_specs=[
                pl.BlockSpec((tn, d), lambda i, k: (i, 0)),
                pl.BlockSpec((tn, 1), lambda i, k: (i, 0)),
                # lut tiles for k < kl; index frozen afterwards (DMA elided).
                pl.BlockSpec((tc, d), lambda i, k: (jnp.minimum(k, kl - 1), 0)),
                # queue tiles for k >= kl; block 0 resident during lut phase.
                pl.BlockSpec((tc, d), lambda i, k: (jnp.maximum(k - kl, 0), 0)),
            ],
            out_specs=pl.BlockSpec((tn, 1), lambda i, k: (i, 0)),
            scratch_shapes=[pltpu.VMEM((tn, 1), jnp.float32),
                            pltpu.VMEM((tn, 1), jnp.float32),
                            pltpu.VMEM((tn, 1), jnp.float32),
                            pltpu.VMEM((tn, d), jnp.bfloat16)],
        ),
        compiler_params=pltpu.CompilerParams(
            dimension_semantics=("parallel", "arbitrary")),
    )(x, tgt, lut.astype(jnp.float32), queue.astype(jnp.float32))

    # torch: if torch.sum(mask) == 0: return 0.0 ; else mean over masked rows.
    mask = (target >= 0) & (target <= num_pid)
    n_valid = jnp.sum(mask.astype(jnp.float32))
    loss_sum = jnp.sum(per_row[:, 0])
    return jnp.where(n_valid > 0, loss_sum / jnp.maximum(n_valid, 1.0), 0.0)


def _reference_jax(reid_feat, target, lut, queue, temperature):
    """Pure-JAX f32 reference for correctness check."""
    num_pid = lut.shape[0]
    w = jnp.concatenate([lut, queue], axis=0)
    logits = (reid_feat @ w.T) * temperature
    mask = (target >= 0) & (target <= num_pid)
    logp = jax.nn.log_softmax(logits, axis=-1)
    safe_tgt = jnp.clip(target, 0, w.shape[0] - 1)
    nll = -jnp.take_along_axis(logp, safe_tgt[:, None], axis=-1)[:, 0]
    n_valid = jnp.sum(mask.astype(jnp.float32))
    return jnp.where(n_valid > 0,
                     jnp.sum(nll * mask.astype(jnp.float32)) / jnp.maximum(n_valid, 1.0),
                     0.0)


if __name__ == "__main__":
    # Small, module-consistent shapes; sizes chosen so the class axis streams
    # over multiple tiles (2 lut tiles, one ragged, + 1 queue tile).
    N = 16           # number of RoI reid features
    D = 128          # reid_dim
    NUM_PID = 96     # labeled identities
    QUEUE = 64       # unlabeled queue size
    TEMPERATURE = 10.0

    key = jax.random.PRNGKey(0)
    k1, k2, k3 = jax.random.split(key, 3)

    lut = jax.random.normal(k1, (NUM_PID, D), dtype=jnp.float32)
    lut = lut / jnp.linalg.norm(lut, axis=-1, keepdims=True)
    queue = jax.random.normal(k2, (QUEUE, D), dtype=jnp.float32)
    queue = queue / jnp.linalg.norm(queue, axis=-1, keepdims=True)

    reid_feat = jax.random.normal(k3, (N, D), dtype=jnp.float32)
    reid_feat = reid_feat / jnp.linalg.norm(reid_feat, axis=-1, keepdims=True)

    # Targets: labeled ids, unlabeled (=num_pid), background (=num_pid+1),
    # negative (-1). Background / negative rows get masked out.
    target = jnp.array([3, 17, 42, NUM_PID, 7, NUM_PID + 1, -1, 63,
                        95, 80, 12, NUM_PID, 0, 31, NUM_PID + 1, 5],
                       dtype=jnp.int32)
    flags_ = jnp.ones((N,), dtype=jnp.int32)   # gt flags (backward-only)

    loss = oim_loss_forward(reid_feat, target, flags_, lut, queue, TEMPERATURE)
    loss = jax.block_until_ready(loss)

    ref = _reference_jax(reid_feat, target, lut, queue, TEMPERATURE)
    # bf16 MXU operands (f32 accumulation) -> loosen tolerance vs f32 reference.
    assert jnp.allclose(loss, ref, rtol=2e-2, atol=3e-2), (loss, ref)

    # Empty-mask path: all rows invalid -> loss exactly 0.0.
    target_bad = jnp.full((N,), -1, dtype=jnp.int32)
    loss0 = jax.block_until_ready(
        oim_loss_forward(reid_feat, target_bad, flags_, lut, queue, TEMPERATURE))
    assert float(loss0) == 0.0, loss0

    print("KERNEL_OK")
</pallas_src>

<mosaic_0001>
module attributes {stable_mosaic.version = 11 : i64} {
  func.func @_oim_ce_kernel(%arg0: i32, %arg1: i32, %arg2: memref<16x128xf32, #tpu.memory_space<vmem>>, %arg3: memref<16x1xi32, #tpu.memory_space<vmem>>, %arg4: memref<64x128xf32, #tpu.memory_space<vmem>>, %arg5: memref<64x128xf32, #tpu.memory_space<vmem>>, %arg6: memref<16x1xf32, #tpu.memory_space<vmem>>, %arg7: memref<16x1xf32, #tpu.memory_space<vmem>>, %arg8: memref<16x1xf32, #tpu.memory_space<vmem>>, %arg9: memref<16x1xf32, #tpu.memory_space<vmem>>, %arg10: memref<16x128xbf16, #tpu.memory_space<vmem>>) attributes {dimension_semantics = [#tpu.dimension_semantics<parallel>, #tpu.dimension_semantics<arbitrary>], iteration_bounds = array<i64: 1, 3>, scalar_prefetch = 0 : i64, scratch_operands = 4 : i64, tpu.core_type = #tpu.core_type<tc>, window_params = [{transform_indices = @transform_0, window_bounds = array<i64: 16, 128>}, {transform_indices = @transform_1, window_bounds = array<i64: 16, 1>}, {transform_indices = @transform_2, window_bounds = array<i64: 64, 128>}, {transform_indices = @transform_3, window_bounds = array<i64: 64, 128>}, {transform_indices = @transform_4, window_bounds = array<i64: 16, 1>}]} {
    %c0_i32 = arith.constant 0 : i32
    %0 = arith.cmpi eq, %arg1, %c0_i32 : i32
    %1 = arith.extui %0 : i1 to i32
    %c0_i32_0 = arith.constant 0 : i32
    %2 = arith.cmpi ne, %1, %c0_i32_0 : i32
    scf.if %2 {
      %cst = arith.constant -1.000000e+30 : f32
      %13 = vector.broadcast %cst : f32 to vector<16x1xf32>
      %c0_7 = arith.constant 0 : index
      %c0_8 = arith.constant 0 : index
      %14 = vector.load %arg7[%c0_7, %c0_8] : memref<16x1xf32, #tpu.memory_space<vmem>>, vector<16x1xf32>
      tpu.vector_store %arg7[%c0_7, %c0_8], %13 {strides = array<i32>} : memref<16x1xf32, #tpu.memory_space<vmem>>, vector<16x1xf32>,
      %cst_9 = arith.constant 0.000000e+00 : f32
      %15 = vector.broadcast %cst_9 : f32 to vector<16x1xf32>
      %c0_10 = arith.constant 0 : index
      %c0_11 = arith.constant 0 : index
      %16 = vector.load %arg8[%c0_10, %c0_11] : memref<16x1xf32, #tpu.memory_space<vmem>>, vector<16x1xf32>
      tpu.vector_store %arg8[%c0_10, %c0_11], %15 {strides = array<i32>} : memref<16x1xf32, #tpu.memory_space<vmem>>, vector<16x1xf32>,
      %cst_12 = arith.constant 0.000000e+00 : f32
      %17 = vector.broadcast %cst_12 : f32 to vector<16x1xf32>
      %c0_13 = arith.constant 0 : index
      %c0_14 = arith.constant 0 : index
      %18 = vector.load %arg9[%c0_13, %c0_14] : memref<16x1xf32, #tpu.memory_space<vmem>>, vector<16x1xf32>
      tpu.vector_store %arg9[%c0_13, %c0_14], %17 {strides = array<i32>} : memref<16x1xf32, #tpu.memory_space<vmem>>, vector<16x1xf32>,
      %c0_15 = arith.constant 0 : index
      %c0_16 = arith.constant 0 : index
      %19 = vector.load %arg2[%c0_15, %c0_16] : memref<16x128xf32, #tpu.memory_space<vmem>>, vector<16x128xf32>
      %cst_17 = arith.constant 1.000000e+01 : f32
      %20 = vector.broadcast %cst_17 : f32 to vector<16x128xf32>
      %21 = arith.mulf %19, %20 : vector<16x128xf32>
      %22 = arith.truncf %21 : vector<16x128xf32> to vector<16x128xbf16>
      %c0_18 = arith.constant 0 : index
      %c0_19 = arith.constant 0 : index
      %23 = vector.load %arg10[%c0_18, %c0_19] : memref<16x128xbf16, #tpu.memory_space<vmem>>, vector<16x128xbf16>
      tpu.vector_store %arg10[%c0_18, %c0_19], %22 {strides = array<i32>} : memref<16x128xbf16, #tpu.memory_space<vmem>>, vector<16x128xbf16>,
    } else {
    }
    %c0 = arith.constant 0 : index
    %c0_1 = arith.constant 0 : index
    %3 = vector.load %arg3[%c0, %c0_1] : memref<16x1xi32, #tpu.memory_space<vmem>>, vector<16x1xi32>
    %c2_i32 = arith.constant 2 : i32
    %4 = arith.cmpi slt, %arg1, %c2_i32 : i32
    %5 = arith.extui %4 : i1 to i32
    %c0_i32_2 = arith.constant 0 : i32
    %6 = arith.cmpi ne, %5, %c0_i32_2 : i32
    scf.if %6 {
      %c0_7 = arith.constant 0 : index
      %c0_8 = arith.constant 0 : index
      %13 = vector.load %arg4[%c0_7, %c0_8] : memref<64x128xf32, #tpu.memory_space<vmem>>, vector<64x128xf32>
      %14 = arith.truncf %13 : vector<64x128xf32> to vector<64x128xbf16>
      %c0_9 = arith.constant 0 : index
      %c0_10 = arith.constant 0 : index
      %15 = vector.load %arg10[%c0_9, %c0_10] : memref<16x128xbf16, #tpu.memory_space<vmem>>, vector<16x128xbf16>
      %cst = arith.constant dense<0.000000e+00> : vector<16x64xf32>
      %16 = tpu.matmul %15, %14, %cst {dimension_numbers = #tpu.dot_dimension_numbers<[1], [1], [0], [0], [0, 0, 1, 0], [], []>} : vector<16x128xbf16>, vector<64x128xbf16>, vector<16x64xf32> -> vector<16x64xf32>
      %17 = tpu.iota {dimensions = array<i32: 1>} : vector<16x64xi32>
      %c64_i32 = arith.constant 64 : i32
      %18 = arith.muli %arg1, %c64_i32 : i32
      %c96_i32 = arith.constant 96 : i32
      %19 = arith.subi %c96_i32, %18 : i32
      %20 = vector.broadcast %19 : i32 to vector<16x64xi32>
      %21 = arith.cmpi slt, %17, %20 : vector<16x64xi32>
      %cst_11 = arith.constant -1.000000e+30 : f32
      %22 = vector.broadcast %cst_11 : f32 to vector<16x64xf32>
      %23 = arith.select %21, %16, %22 : vector<16x64xi1>, vector<16x64xf32>
      %c64_i32_12 = arith.constant 64 : i32
      %24 = arith.muli %arg1, %c64_i32_12 : i32
      %c0_i32_13 = arith.constant 0 : i32
      %25 = arith.addi %c0_i32_13, %24 : i32
      %26 = vector.broadcast %25 : i32 to vector<16x64xi32>
      %27 = arith.addi %26, %17 : vector<16x64xi32>
      %28 = vector.broadcast %3 : vector<16x1xi32> to vector<16x64xi32>
      %29 = arith.cmpi eq, %27, %28 : vector<16x64xi32>
      %30 = arith.andi %29, %21 : vector<16x64xi1>
      %c0_14 = arith.constant 0 : index
      %c0_15 = arith.constant 0 : index
      %31 = vector.load %arg9[%c0_14, %c0_15] : memref<16x1xf32, #tpu.memory_space<vmem>>, vector<16x1xf32>
      %cst_16 = arith.constant 0.000000e+00 : f32
      %32 = vector.broadcast %cst_16 : f32 to vector<16x64xf32>
      %33 = arith.select %30, %23, %32 : vector<16x64xi1>, vector<16x64xf32>
      %cst_17 = arith.constant dense<0.000000e+00> : vector<16xf32>
      %34 = vector.multi_reduction <add>, %33, %cst_17 [1] : vector<16x64xf32> to vector<16xf32>
      %35 = vector.shape_cast %34 : vector<16xf32> to vector<16x1xf32>
      %36 = arith.addf %31, %35 : vector<16x1xf32>
      %c0_18 = arith.constant 0 : index
      %c0_19 = arith.constant 0 : index
      %37 = vector.load %arg9[%c0_18, %c0_19] : memref<16x1xf32, #tpu.memory_space<vmem>>, vector<16x1xf32>
      tpu.vector_store %arg9[%c0_18, %c0_19], %36 {strides = array<i32>} : memref<16x1xf32, #tpu.memory_space<vmem>>, vector<16x1xf32>,
      %c0_20 = arith.constant 0 : index
      %c0_21 = arith.constant 0 : index
      %38 = vector.load %arg7[%c0_20, %c0_21] : memref<16x1xf32, #tpu.memory_space<vmem>>, vector<16x1xf32>
      %cst_22 = arith.constant dense<0xFF800000> : vector<16xf32>
      %39 = vector.multi_reduction <maximumf>, %23, %cst_22 [1] : vector<16x64xf32> to vector<16xf32>
      %40 = vector.shape_cast %39 : vector<16xf32> to vector<16x1xf32>
      %41 = arith.maximumf %38, %40 : vector<16x1xf32>
      %42 = arith.subf %38, %41 : vector<16x1xf32>
      %43 = math.exp %42 : vector<16x1xf32>
      %c0_23 = arith.constant 0 : index
      %c0_24 = arith.constant 0 : index
      %44 = vector.load %arg8[%c0_23, %c0_24] : memref<16x1xf32, #tpu.memory_space<vmem>>, vector<16x1xf32>
      %45 = arith.mulf %43, %44 : vector<16x1xf32>
      %46 = vector.broadcast %41 : vector<16x1xf32> to vector<16x64xf32>
      %47 = arith.subf %23, %46 : vector<16x64xf32>
      %48 = math.exp %47 : vector<16x64xf32>
      %cst_25 = arith.constant dense<0.000000e+00> : vector<16xf32>
      %49 = vector.multi_reduction <add>, %48, %cst_25 [1] : vector<16x64xf32> to vector<16xf32>
      %50 = vector.shape_cast %49 : vector<16xf32> to vector<16x1xf32>
      %51 = arith.addf %45, %50 : vector<16x1xf32>
      %c0_26 = arith.constant 0 : index
      %c0_27 = arith.constant 0 : index
      %52 = vector.load %arg8[%c0_26, %c0_27] : memref<16x1xf32, #tpu.memory_space<vmem>>, vector<16x1xf32>
      tpu.vector_store %arg8[%c0_26, %c0_27], %51 {strides = array<i32>} : memref<16x1xf32, #tpu.memory_space<vmem>>, vector<16x1xf32>,
      %c0_28 = arith.constant 0 : index
      %c0_29 = arith.constant 0 : index
      %53 = vector.load %arg7[%c0_28, %c0_29] : memref<16x1xf32, #tpu.memory_space<vmem>>, vector<16x1xf32>
      tpu.vector_store %arg7[%c0_28, %c0_29], %41 {strides = array<i32>} : memref<16x1xf32, #tpu.memory_space<vmem>>, vector<16x1xf32>,
    } else {
    }
    %c2_i32_3 = arith.constant 2 : i32
    %7 = arith.cmpi sge, %arg1, %c2_i32_3 : i32
    %8 = arith.extui %7 : i1 to i32
    %c0_i32_4 = arith.constant 0 : i32
    %9 = arith.cmpi ne, %8, %c0_i32_4 : i32
    scf.if %9 {
      %c0_7 = arith.constant 0 : index
      %c0_8 = arith.constant 0 : index
      %13 = vector.load %arg5[%c0_7, %c0_8] : memref<64x128xf32, #tpu.memory_space<vmem>>, vector<64x128xf32>
      %c2_i32_9 = arith.constant 2 : i32
      %14 = arith.subi %arg1, %c2_i32_9 : i32
      %15 = arith.truncf %13 : vector<64x128xf32> to vector<64x128xbf16>
      %c0_10 = arith.constant 0 : index
      %c0_11 = arith.constant 0 : index
      %16 = vector.load %arg10[%c0_10, %c0_11] : memref<16x128xbf16, #tpu.memory_space<vmem>>, vector<16x128xbf16>
      %cst = arith.constant dense<0.000000e+00> : vector<16x64xf32>
      %17 = tpu.matmul %16, %15, %cst {dimension_numbers = #tpu.dot_dimension_numbers<[1], [1], [0], [0], [0, 0, 1, 0], [], []>} : vector<16x128xbf16>, vector<64x128xbf16>, vector<16x64xf32> -> vector<16x64xf32>
      %18 = tpu.iota {dimensions = array<i32: 1>} : vector<16x64xi32>
      %c64_i32 = arith.constant 64 : i32
      %19 = arith.muli %14, %c64_i32 : i32
      %c64_i32_12 = arith.constant 64 : i32
      %20 = arith.subi %c64_i32_12, %19 : i32
      %21 = vector.broadcast %20 : i32 to vector<16x64xi32>
      %22 = arith.cmpi slt, %18, %21 : vector<16x64xi32>
      %cst_13 = arith.constant -1.000000e+30 : f32
      %23 = vector.broadcast %cst_13 : f32 to vector<16x64xf32>
      %24 = arith.select %22, %17, %23 : vector<16x64xi1>, vector<16x64xf32>
      %c64_i32_14 = arith.constant 64 : i32
      %25 = arith.muli %14, %c64_i32_14 : i32
      %c96_i32 = arith.constant 96 : i32
      %26 = arith.addi %c96_i32, %25 : i32
      %27 = vector.broadcast %26 : i32 to vector<16x64xi32>
      %28 = arith.addi %27, %18 : vector<16x64xi32>
      %29 = vector.broadcast %3 : vector<16x1xi32> to vector<16x64xi32>
      %30 = arith.cmpi eq, %28, %29 : vector<16x64xi32>
      %31 = arith.andi %30, %22 : vector<16x64xi1>
      %c0_15 = arith.constant 0 : index
      %c0_16 = arith.constant 0 : index
      %32 = vector.load %arg9[%c0_15, %c0_16] : memref<16x1xf32, #tpu.memory_space<vmem>>, vector<16x1xf32>
      %cst_17 = arith.constant 0.000000e+00 : f32
      %33 = vector.broadcast %cst_17 : f32 to vector<16x64xf32>
      %34 = arith.select %31, %24, %33 : vector<16x64xi1>, vector<16x64xf32>
      %cst_18 = arith.constant dense<0.000000e+00> : vector<16xf32>
      %35 = vector.multi_reduction <add>, %34, %cst_18 [1] : vector<16x64xf32> to vector<16xf32>
      %36 = vector.shape_cast %35 : vector<16xf32> to vector<16x1xf32>
      %37 = arith.addf %32, %36 : vector<16x1xf32>
      %c0_19 = arith.constant 0 : index
      %c0_20 = arith.constant 0 : index
      %38 = vector.load %arg9[%c0_19, %c0_20] : memref<16x1xf32, #tpu.memory_space<vmem>>, vector<16x1xf32>
      tpu.vector_store %arg9[%c0_19, %c0_20], %37 {strides = array<i32>} : memref<16x1xf32, #tpu.memory_space<vmem>>, vector<16x1xf32>,
      %c0_21 = arith.constant 0 : index
      %c0_22 = arith.constant 0 : index
      %39 = vector.load %arg7[%c0_21, %c0_22] : memref<16x1xf32, #tpu.memory_space<vmem>>, vector<16x1xf32>
      %cst_23 = arith.constant dense<0xFF800000> : vector<16xf32>
      %40 = vector.multi_reduction <maximumf>, %24, %cst_23 [1] : vector<16x64xf32> to vector<16xf32>
      %41 = vector.shape_cast %40 : vector<16xf32> to vector<16x1xf32>
      %42 = arith.maximumf %39, %41 : vector<16x1xf32>
      %43 = arith.subf %39, %42 : vector<16x1xf32>
      %44 = math.exp %43 : vector<16x1xf32>
      %c0_24 = arith.constant 0 : index
      %c0_25 = arith.constant 0 : index
      %45 = vector.load %arg8[%c0_24, %c0_25] : memref<16x1xf32, #tpu.memory_space<vmem>>, vector<16x1xf32>
      %46 = arith.mulf %44, %45 : vector<16x1xf32>
      %47 = vector.broadcast %42 : vector<16x1xf32> to vector<16x64xf32>
      %48 = arith.subf %24, %47 : vector<16x64xf32>
      %49 = math.exp %48 : vector<16x64xf32>
      %cst_26 = arith.constant dense<0.000000e+00> : vector<16xf32>
      %50 = vector.multi_reduction <add>, %49, %cst_26 [1] : vector<16x64xf32> to vector<16xf32>
      %51 = vector.shape_cast %50 : vector<16xf32> to vector<16x1xf32>
      %52 = arith.addf %46, %51 : vector<16x1xf32>
      %c0_27 = arith.constant 0 : index
      %c0_28 = arith.constant 0 : index
      %53 = vector.load %arg8[%c0_27, %c0_28] : memref<16x1xf32, #tpu.memory_space<vmem>>, vector<16x1xf32>
      tpu.vector_store %arg8[%c0_27, %c0_28], %52 {strides = array<i32>} : memref<16x1xf32, #tpu.memory_space<vmem>>, vector<16x1xf32>,
      %c0_29 = arith.constant 0 : index
      %c0_30 = arith.constant 0 : index
      %54 = vector.load %arg7[%c0_29, %c0_30] : memref<16x1xf32, #tpu.memory_space<vmem>>, vector<16x1xf32>
      tpu.vector_store %arg7[%c0_29, %c0_30], %42 {strides = array<i32>} : memref<16x1xf32, #tpu.memory_space<vmem>>, vector<16x1xf32>,
    } else {
    }
    %c2_i32_5 = arith.constant 2 : i32
    %10 = arith.cmpi eq, %arg1, %c2_i32_5 : i32
    %11 = arith.extui %10 : i1 to i32
    %c0_i32_6 = arith.constant 0 : i32
    %12 = arith.cmpi ne, %11, %c0_i32_6 : i32
    scf.if %12 {
      %c0_i32_7 = arith.constant 0 : i32
      %13 = vector.broadcast %c0_i32_7 : i32 to vector<16x1xi32>
      %14 = arith.cmpi sge, %3, %13 : vector<16x1xi32>
      %c96_i32 = arith.constant 96 : i32
      %15 = vector.broadcast %c96_i32 : i32 to vector<16x1xi32>
      %16 = arith.cmpi sle, %3, %15 : vector<16x1xi32>
      %17 = arith.andi %14, %16 : vector<16x1xi1>
      %18 = arith.extui %17 : vector<16x1xi1> to vector<16x1xi32>
      %19 = arith.sitofp %18 : vector<16x1xi32> to vector<16x1xf32>
      %c0_8 = arith.constant 0 : index
      %c0_9 = arith.constant 0 : index
      %20 = vector.load %arg7[%c0_8, %c0_9] : memref<16x1xf32, #tpu.memory_space<vmem>>, vector<16x1xf32>
      %c0_10 = arith.constant 0 : index
      %c0_11 = arith.constant 0 : index
      %21 = vector.load %arg8[%c0_10, %c0_11] : memref<16x1xf32, #tpu.memory_space<vmem>>, vector<16x1xf32>
      %22 = math.log %21 : vector<16x1xf32>
      %23 = arith.addf %20, %22 : vector<16x1xf32>
      %c0_12 = arith.constant 0 : index
      %c0_13 = arith.constant 0 : index
      %24 = vector.load %arg9[%c0_12, %c0_13] : memref<16x1xf32, #tpu.memory_space<vmem>>, vector<16x1xf32>
      %25 = arith.subf %23, %24 : vector<16x1xf32>
      %26 = arith.mulf %25, %19 : vector<16x1xf32>
      %c0_14 = arith.constant 0 : index
      %c0_15 = arith.constant 0 : index
      %27 = vector.load %arg6[%c0_14, %c0_15] : memref<16x1xf32, #tpu.memory_space<vmem>>, vector<16x1xf32>
      tpu.vector_store %arg6[%c0_14, %c0_15], %26 {strides = array<i32>} : memref<16x1xf32, #tpu.memory_space<vmem>>, vector<16x1xf32>,
    } else {
    }
    return
  }
  func.func @transform_0(%arg0: i32, %arg1: i32) -> (i32, i32) {
    %c0_i32 = arith.constant 0 : i32
    %c0_i32_0 = arith.constant 0 : i32
    return %arg0, %c0_i32 : i32, i32
  }
  func.func @transform_1(%arg0: i32, %arg1: i32) -> (i32, i32) {
    %c0_i32 = arith.constant 0 : i32
    %c0_i32_0 = arith.constant 0 : i32
    return %arg0, %c0_i32 : i32, i32
  }
  func.func @transform_2(%arg0: i32, %arg1: i32) -> (i32, i32) {
    %c1_i32 = arith.constant 1 : i32
    %0 = arith.minsi %arg1, %c1_i32 : i32
    %c0_i32 = arith.constant 0 : i32
    %c0_i32_0 = arith.constant 0 : i32
    return %0, %c0_i32 : i32, i32
  }
  func.func @transform_3(%arg0: i32, %arg1: i32) -> (i32, i32) {
    %c2_i32 = arith.constant 2 : i32
    %0 = arith.subi %arg1, %c2_i32 : i32
    %c0_i32 = arith.constant 0 : i32
    %1 = arith.maxsi %0, %c0_i32 : i32
    %c0_i32_0 = arith.constant 0 : i32
    %c0_i32_1 = arith.constant 0 : i32
    return %1, %c0_i32_0 : i32, i32
  }
  func.func @transform_4(%arg0: i32, %arg1: i32) -> (i32, i32) {
    %c0_i32 = arith.constant 0 : i32
    %c0_i32_0 = arith.constant 0 : i32
    return %arg0, %c0_i32 : i32, i32
  }
}

</mosaic_0001>

<bundles_post_ra>
// kernel: tpu_custom_call.1
= control target key start
LH: loop header
LB: loop body
LE: loop exit
PB: predicated region body
PF: predicated region fallthrough
CT: control target
= control target key end

     0   :  { %9 = vsyncpa [#allocation7], 0  ;;  %s1436_s0 = inlined_call_operand.vmem [shape: f32[16,128], index: 0, kind: input, shape index: {}]   ;;  %s1437_s1 = inlined_call_operand.vmem [shape: s32[16,1], index: 1, kind: input, shape index: {}]   ;;  %s1438_s2 = inlined_call_operand.hbm [shape: f32[96,128], index: 2, kind: input, shape index: {}]   ;;  %s1439_s3 = inlined_call_operand.hbm [shape: f32[64,128], index: 3, kind: input, shape index: {}]   ;;  %s1440_s4 = inlined_call_operand.vmem [shape: f32[16,1], index: 4, kind: output, shape index: {}]  }
   0x1   :  { %11 = vsyncpa [#allocation7 + $0x1], 0 }
   0x2   :  { %12 = vsyncpa [#allocation9], 0 }
   0x3   :  { %14 = vsyncpa [#allocation9 + $0x1], 0  ;;  %s1167_s15 = smov 0   ;;  %s1169_s16 = smov 0  }
   0x4   :  { %s1171_s17 = smov 0   ;;  %s1173_s18 = smov 0  }
   0x5   :  { %s1175_s19 = smov 0   ;;  %s1177_s20 = smov 0  }
   0x6   :  { %s1179_s21 = smov 0   ;;  %s1181_s22 = smov 0  }
   0x7 LB: > { %s812_s23 = sadd.s32 4294967295, %s1125_s22   ;;  %s29_s24 = sadd.s32 1, %s1121_s21  ;;  %s1125_s22 = sphi %s1181_s22, %s20_s22   ;;  %s1121_s21 = sphi %s1179_s21, %s1455_s21   ;;  %s1117_s20 = sphi %s1177_s20, %s1454_s20   ;;  %s1113_s19 = sphi %s1175_s19, %s1453_s19   ;;  %s1109_s18 = sphi %s1173_s18, %s1452_s18   ;;  %s1105_s17 = sphi %s1171_s17, %s1451_s17   ;;  %s1101_s16 = sphi %s1169_s16, %s1417_s16   ;;  %s1097_s15 = sphi %s1167_s15, %s1450_s15  }
   0x8   : > { %p30_p0 = scmp.ge.s32.totalorder %s29_s24, 3  ;;  %p88_p1 = scmp.lt.s32.totalorder %s1121_s21, 1 }
   0x9   : > { %s95_s25 = sadd.s32 1, %s1113_s19  ;;  %p102_p2 = scmp.ne.s32.totalorder %s1113_s19, %s1109_s18 }
   0xa   : > { %s1457_s24 = smov (%p30_p0, %s29_s24), 0  ;;  %p103_p4 = scmp.eq.s32.totalorder %s1125_s22, 0 }
   0xb   : > { %s1212_s26 = scalar_select %p88_p1, %s1121_s21, 1 }
   0xc   : > { %p90_p3 = scmp.lt.s32.totalorder %s1457_s24, 1  ;;  %p108_p5 = scmp.ne.s32.totalorder %s1109_s18, %s1105_s17 }
   0xd   : > { %p109_p6 = scmp.eq.s32.totalorder %s812_s23, 0  ;;  %p104_p7 = por %p103_p4, %p102_p2 }
   0xe   : > { %s91_s27 = scalar_select %p90_p3, %s1457_s24, 1 }
   0xf   : > { %p1218_p8 = por %p109_p6, %p108_p5  ;;  %p1094_p10 = scmp.ne.s32.totalorder %s1101_s16, 0 }
  0x10   : > { %s92_s29 = ssub.s32 %s1212_s26, %s91_s27  ;;  %p140_p11 = scmp.ne.s32.totalorder %s1101_s16, %s1097_s15 }
  0x11   : > { %s1443_s28 = scalar_select %p1218_p8, 1, 0 }
  0x12   : > { %p93_p9 = scmp.eq.s32.totalorder %s92_s29, 0  ;;  %p1228_p12 = por %p1094_p10, %p103_p4 }
  0x13   : > { %p1232_p13 = por %p140_p11, %p109_p6  ;;  %p818_p0 = scmp.ge.s32.totalorder %s1125_s22, 3 }
  0x14   : > { %s1224_s30 = scalar_select %p93_p9, %s1113_s19, %s95_s25  }
  0x15   : > { %s1445_s6 = scalar_select %p1232_p13, 1, 0 }
  0x16   : > { %204 = sbr.rel (%p818_p0) target bundleno = 86 (0x56), region = 24 }
  0x1d   : > { %207 = sbr.rel (!%p104_p7) target bundleno = 64 (0x40), region = 28  ;;  %s208_s7 = sand.u32 (%p104_p7), 1, %s1113_s19  }
  0x1e   : > { %s820_s8 = sshll.u32 (%p104_p7), %s1212_s26, 3  ;;  %s819_s9 = sshll.u32 (%p104_p7), %s208_s7, 6 }
  0x1f   : > { %s216_s10 = ssub.s32 (%p104_p7), 12, %s820_s8  ;;  %s1242_s13 = scalar_lea.sflag (%p104_p7), [#allocation7], %s208_s7 }
  0x20   : > { %p217_p1 = scmp.lt.s32.totalorder (%p104_p7), %s216_s10, 8  ;;  %s212_s14 = scalar_lea.vmem (%p104_p7), [#allocation6], %s819_s9 }
  0x24   : > { %s1459_s10 = smov (!%p217_p1, %s216_s10), 8 }
  0x25   : > { %s1239_s11 = sshll.u32 %s1459_s10, 7 }
  0x26   : > { %s221_s12 = ssub.s32 1024, %s1239_s11 }
  0x27   : > { %222 = vsyncadd %s1242_s13, %s221_s12  ;;  %p822_p2 = scmp.ne.s32.totalorder %s1239_s11, 0  ;;  %s846_s15 = sshll.u32 %s1212_s26, 10 }
  0x28   : > { %s1250_s25 = scalar_lea.hbm %s1438_s2, %s846_s15  ;;  %s227_s27 = sshll.u32 %s212_s14, 4  ;;  %s1252_s27 = int_to_ptr.vmem [resolvable:$true] %s227_s27 }
  0x29   : > { %s994_s29 = scalar_lea.hbm %s1250_s25, %s1239_s11  ;;  %s998_s26 = scalar_lea.hbm %s1438_s2, 1536 }
  0x2a   : > { %p995_p3 = scmp.ne.s32.totalorder %s1250_s25, %s994_s29  ;;  %p999_p6 = scmp.lt.u32.totalorder %s1250_s25, %s1438_s2 }
  0x2b   : > { %p1000_p7 = scmp.lt.u32.totalorder %s998_s26, %s994_s29  ;;  %p1002_p10 = scmp.lt.u32.totalorder %s994_s29, %s1250_s25 }
  0x2c   : > { %p996_p4 = pnand %p995_p3, %p822_p2 }
  0x2d   : > { %p1001_p9 = por %p1000_p7, %p999_p6 }
  0x2e   : > { %p997_p5 = pneg %p996_p4 }
  0x2f   : > { %p1003_p11 = por %p1002_p10, %p1001_p9 }
  0x31   : > { %p1004_p0 = pnand %p1003_p11, %p997_p5 }
  0x33   : > { %1007 = shalt.err (!%p1004_p0)
}
  0x34   : > { %s1008_s12 = scalar_lea.vmem %s1252_s27, %s1239_s11  ;;  %s1127_s14 = smov [#allocation6]  }
  0x35   : > { %p1009_p1 = scmp.ne.s32.totalorder %s1252_s27, %s1008_s12  ;;  %s1012_s15 = sshll.u32 %s1127_s14, 4  ;;  %s1013_s15 = int_to_ptr.vmem [resolvable:$false] %s1012_s15 }
  0x36   : > { %s1014_s17 = scalar_lea.vmem %s1013_s15, 2048  ;;  %p1015_p13 = scmp.lt.s32.totalorder %s1252_s27, %s1013_s15 }
  0x37   : > { %p1010_p3 = pnand %p1009_p1, %p822_p2  ;;  %p1016_p6 = scmp.lt.s32.totalorder %s1014_s17, %s1008_s12 }
  0x39   : > { %p1011_p4 = pneg %p1010_p3  ;;  %p1017_p7 = por %p1016_p6, %p1015_p13 }
  0x3b   : > { %p1018_p9 = pnand %p1017_p7, %p1011_p4 }
  0x3d   : > { %1021 = shalt.err (!%p1018_p9)
}
  0x3e   : > { %s1128_s23 = smov 128   ;;  %s1129_s29 = smov 8  }
  0x3f   : > { %233 = dma.hbm_to_vmem [thread:$0]  (%p822_p2), %s1250_s25, %s1239_s11, %s1252_s27, %s1242_s13, %s1128_s23, %s1128_s23, %s1129_s29  }
  0x40 PF: > { %s1130_s7 = smov [#allocation8]   ;;  %s1022_s10 = scalar_lea.hbm %s1439_s3, 1024 }
  0x41   : > { %s251_s8 = sshll.u32 %s1130_s7, 4  ;;  %p1023_p13 = scmp.ne.s32.totalorder %s1439_s3, %s1022_s10  ;;  %s252_s8 = int_to_ptr.vmem [resolvable:$true] %s251_s8 }
  0x42   : > { %p1028_p11 = scmp.lt.u32.totalorder %s1022_s10, %s1022_s10  ;;  %p1030_p2 = scmp.lt.u32.totalorder %s1022_s10, %s1439_s3 }
  0x43   : > { %p1024_p5 = pnand %p1023_p13, %p1228_p12 }
  0x44   : > { %p1031_p0 = por %p1030_p2, %p1028_p11 }
  0x45   : > { %p1025_p10 = pneg %p1024_p5 }
  0x47   : > { %p1032_p1 = pnand %p1031_p0, %p1025_p10 }
  0x49   : > { %1035 = shalt.err (!%p1032_p1)
}
  0x4a   : > { %s1036_s11 = scalar_lea.vmem %s252_s8, 1024  ;;  %s1042_s13 = scalar_lea.vmem %s252_s8, 2048 }
  0x4b   : > { %p1037_p3 = scmp.ne.s32.totalorder %s252_s8, %s1036_s11  ;;  %p1043_p7 = scmp.lt.s32.totalorder %s252_s8, %s252_s8 }
  0x4c   : > { %p1044_p9 = scmp.lt.s32.totalorder %s1042_s13, %s1036_s11 }
  0x4d   : > { %p1038_p4 = pnand %p1037_p3, %p1228_p12 }
  0x4e   : > { %p1045_p8 = por %p1044_p9, %p1043_p7 }
  0x4f   : > { %p1039_p6 = pneg %p1038_p4 }
  0x51   : > { %p1046_p13 = pnand %p1045_p8, %p1039_p6 }
  0x53   : > { %1049 = shalt.err (!%p1046_p13)
}
  0x54   : > { %s1131_s25 = smov 128   ;;  %s1132_s27 = smov 8  }
  0x55   : > { %882 = dma.hbm_to_vmem [thread:$0]  (%p1228_p12), %s1439_s3, 1024, %s252_s8, [#allocation9], %s1131_s25, %s1131_s25, %s1132_s27  }
  0x56 PF: > { %p830_p5 = scmp.ge.s32.totalorder %s1125_s22, 1  ;;  %p259_p10 = scmp.lt.s32.totalorder %s1125_s22, 4 }
  0x58   : > { %p260_p11 = pnand %p830_p5, %p259_p10 }
  0x59   : > { %s265_s7 = sand.u32 (!%p260_p11), 1, %s1109_s18   ;;  %p1446_p8 = scmp.ne.s32.totalorder (!%p260_p11), %s1443_s28, 0 }
  0x5a   : > { %263 = sbr.rel (%p260_p11) target bundleno = 1510 (0x5e6), region = 36  ;;  %s831_s26 = sshll.u32 (!%p260_p11), %s265_s7, 6 }
  0x5b   : > { %s266_s9 = scalar_lea.sflag (!%p260_p11), [#allocation7], %s265_s7  ;;  %s1300_s10 = scalar_lea.vmem (!%p260_p11), [#allocation6], %s831_s26 }
  0x61   : > { %1087 = dma.done.wait (%p1446_p8), %s266_s9, 1024  }
  0x62   : > { %1089 = vsyncadd (%p1446_p8), %s266_s9, 4294966272  ;;  %s274_s5 = sand.u32 1, %s1101_s16   ;;  %p1447_p12 = scmp.ne.s32.totalorder %s1445_s6, 0 }
  0x63   : > { %s832_s8 = sshll.u32 %s274_s5, 6  ;;  %s275_s12 = scalar_lea.sflag [#allocation9], %s274_s5 }
  0x64   : > { %s1307_s14 = scalar_lea.vmem [#allocation8], %s832_s8 }
  0x65   : > { %1091 = dma.done.wait (%p1447_p12), %s275_s12, 1024  }
  0x66   : > { %1093 = vsyncadd (%p1447_p12), %s275_s12, 4294966272  ;;  %p833_p2 = scmp.ne.s32.totalorder %s1117_s20, 0 }
  0x67   : > { %vm352_vm0 = vcmask (!%p833_p2), 7168   ;;  %v359_v0 = vld [vmem:[%s1436_s0] sm:$0xff] (!%p833_p2)  ;;  %v360_v1 = vld [vmem:[%s1436_s0 + $0x8] sm:$0xff] (!%p833_p2)  ;;  %v1133_v2 = vmov (!%p833_p2), -1e+30   ;;  %v1134_v3 = vmov (!%p833_p2), 0.0  }
  0x68   : > { %351 = sbr.rel (%p833_p2) target bundleno = 111 (0x6f), region = 48  ;;  %353 = vst.msk [vmem:[#allocation2] sm:$0xff] (!%p833_p2), %vm352_vm0, %v1133_v2  ;;  %354 = vst.msk [vmem:[#allocation2 + $0x8] sm:$0xff] (!%p833_p2), %vm352_vm0, %v1133_v2  ;;  %v361_v4 = vmul.f32 (!%p833_p2), 10.0, %v359_v0  ;;  %v362_v5 = vmul.f32 (!%p833_p2), 10.0, %v360_v1 }
  0x69   : > { %355 = vst.msk [vmem:[#allocation3] sm:$0xff] (!%p833_p2), %vm352_vm0, %v1134_v3  ;;  %356 = vst.msk [vmem:[#allocation3 + $0x8] sm:$0xff] (!%p833_p2), %vm352_vm0, %v1134_v3 }
  0x6a   : > { %357 = vst.msk [vmem:[#allocation4] sm:$0xff] (!%p833_p2), %vm352_vm0, %v1134_v3  ;;  %358 = vst.msk [vmem:[#allocation4 + $0x8] sm:$0xff] (!%p833_p2), %vm352_vm0, %v1134_v3  ;;  %v363_v6 = vpack.c.bf16 (!%p833_p2), %v362_v5, %v361_v4 }
  0x6c   : > { %364 = vst [vmem:[#allocation5] sm:$0xff] (!%p833_p2), %v363_v6 }
  0x6f PF: > { %v1323_v7 = vld [vmem:[%s1437_s1] sm:$0xff]  ;;  %v1328_v8 = vld [vmem:[%s1437_s1 + $0x8] sm:$0xff]  ;;  %p834_p0 = scmp.ge.s32.totalorder %s1117_s20, 2 }
  0x70   : > { %v371_v9 = vld [vmem:[%s1300_s10] sm:$0xff] (!%p834_p0)  ;;  %v372_v10 = vld [vmem:[%s1300_s10 + $0x8] sm:$0xff] (!%p834_p0)  ;;  %v1135_v11 = vmov (!%p834_p0), 0.0   ;;  %vm1136_vm1 = vmmov (!%p834_p0), 0   ;;  %v373_v13 = vld [vmem:[%s1300_s10 + $0x10] sm:$0xff] (!%p834_p0)  ;;  %v1137_v23 = vmov (!%p834_p0), 0   ;;  %v425_v24 = vlaneseq (!%p834_p0) }
  0x71   : > { %370 = sbr.rel (%p834_p0) target bundleno = 797 (0x31d), region = 52  ;;  %858 = vmatprep.subr.bf16.mxu0 (!%p834_p0), %v1135_v11  ;;  %v379_v12 = vpack.c.bf16 (!%p834_p0), %v372_v10, %v371_v9  ;;  %866 = vmatprep.mubr.msk.bf16.mxu0 (!%p834_p0), %vm1136_vm1, %v1135_v11  ;;  %v374_v14 = vld [vmem:[%s1300_s10 + $0x18] sm:$0xff] (!%p834_p0)  ;;  %v375_v16 = vld [vmem:[%s1300_s10 + $0x20] sm:$0xff] (!%p834_p0)  ;;  %v376_v17 = vld [vmem:[%s1300_s10 + $0x28] sm:$0xff] (!%p834_p0)  ;;  %s835_s23 = sshll.u32 (!%p834_p0), %s1117_s20, 6  ;;  %vm449_vm3 = vcmask (!%p834_p0), 523264  }
  0x72   : > { %v380_v15 = vpack.c.bf16 (!%p834_p0), %v374_v14, %v373_v13  ;;  %v381_v18 = vpack.c.bf16 (!%p834_p0), %v376_v17, %v375_v16  ;;  %v377_v19 = vld [vmem:[%s1300_s10 + $0x30] sm:$0xff] (!%p834_p0)  ;;  %v378_v20 = vld [vmem:[%s1300_s10 + $0x38] sm:$0xff] (!%p834_p0)  ;;  %971 = vset.pattern.permute.xlu0 (!%p834_p0), %v1137_v23  ;;  %970 = vset.pattern.permute.xlu1 (!%p834_p0), %v1137_v23  ;;  %s428_s29 = ssub.s32 (!%p834_p0), 96, %s835_s23  ;;  %v426_v25 = vand.u32 (!%p834_p0), 127, %v425_v24  ;;  %v461_v36 = vld [vmem:[#allocation2] sm:$0xff] (!%p834_p0)  ;;  %vm458_vm4 = vcmask (!%p834_p0), 7168  }
  0x73   : > { %859 = vmatpush3.bf16.xpose.msra.mxu0 (!%p834_p0), %v379_v12  ;;  %v382_v21 = vpack.c.bf16 (!%p834_p0), %v378_v20, %v377_v19  ;;  %v383_v22 = vld [vmem:[#allocation5] sm:$0xff] (!%p834_p0)  ;;  %v429_v26 = vstv (!%p834_p0), %s428_s29  ;;  %v462_v39 = vld [vmem:[#allocation2 + $0x8] sm:$0xff] (!%p834_p0)  ;;  %v433_v44 = vstv (!%p834_p0), %s835_s23  ;;  %v445_v62 = vld [vmem:[#allocation4] sm:$0xff] (!%p834_p0) }
  0x74   : > { %860 = vmatprep.subr.bf16.mxu0 (!%p834_p0), %v1135_v11  ;;  %vm1342_vm2 = vcmp.lt.s32.totalorder (!%p834_p0), %v426_v25, %v429_v26  ;;  %v434_v45 = vadd.s32 (!%p834_p0), %v433_v44, %v426_v25  ;;  %v446_v3 = vld [vmem:[#allocation4 + $0x8] sm:$0xff] (!%p834_p0)  ;;  %v477_v6 = vld [vmem:[#allocation3] sm:$0xff] (!%p834_p0)  ;;  %v478_v13 = vld [vmem:[#allocation3 + $0x8] sm:$0xff] (!%p834_p0) }
  0x7b   : > { %861 = vmatpush3.bf16.xpose.msra.mxu0 %v380_v15 }
  0x7c   : > { %862 = vmatprep.subr.bf16.mxu0 %v1135_v11 }
  0x83   : > { %863 = vmatpush3.bf16.xpose.msra.mxu0 %v381_v18 }
  0x84   : > { %864 = vmatprep.subr.bf16.mxu0 %v1135_v11 }
  0x8b   : > { %865 = vmatpush3.bf16.xpose.msra.mxu0 %v382_v21 }
  0x92   : > { %867 = vmatmul.mubr.bf16.vlgmr.msra.gmra.mrb[0].mxu0 %v383_v22 }
 0x165   : > { %v418_v28 = vpop.f32.mrb[0].mxu0 }
 0x166   : > { %v431_v29 = vsel %vm1342_vm2, %v418_v28, -1e+30  ;;  %v868_v30 = vpop.f32.mrb[1].mxu0 }
 0x167   : > { %v421_v31 = vpop.f32.mrb[2].mxu0  ;;  %v463_v32 = vsel %vm449_vm3, %v431_v29, -inf }
 0x168   : > { %v432_v33 = vsel %vm1342_vm2, %v421_v31, -1e+30  ;;  %464 = vmax.xlane.f32.xlu0 %v463_v32  ;;  %v869_v34 = vpop.f32.mrb[3].mxu0 }
 0x169   : > { %v466_v35 = vsel %vm449_vm3, %v432_v33, -inf }
 0x16c   : > { %467 = vmax.xlane.f32.xlu0 %v466_v35 }
 0x182   : > { %436 = vperm.xlu0 %971, %v1323_v7  }
 0x1f5   : > { %v465_v37 = vpop.xlane.xlu0 %464 }
 0x1f6   : > { %v469_v38 = vmax.f32 %v461_v36, %v465_v37 }
 0x1f8   : > { %v471_v40 = vsub.f32 %v461_v36, %v469_v38  ;;  %507 = vst.msk [vmem:[#allocation2] sm:$0xff] %vm458_vm4, %v469_v38  ;;  %483 = vperm.xlu1 %970, %v469_v38  }
 0x1f9   : > { %v468_v41 = vpop.xlane.xlu0 %467 }
 0x1fa   : > { %v470_v42 = vmax.f32 %v462_v39, %v468_v41  ;;  %v473_v1 = vmul.f32 1.442695, %v471_v40 }
 0x1fc   : > { %v472_v43 = vsub.f32 %v462_v39, %v470_v42  ;;  %508 = vst.msk [vmem:[#allocation2 + $0x8] sm:$0xff] %vm458_vm4, %v470_v42  ;;  %488 = vperm.xlu1 %970, %v470_v42  }
 0x1fe   : > { %v475_v2 = vmul.f32 1.442695, %v472_v43 }
 0x200   : > { %439 = vperm.xlu1 %970, %v1328_v8  }
 0x201   : > { %v437_v46 = vpop.permute.xlu0 %436 }
 0x202   : > { %vm441_vm5 = vcmp.eq.s32.totalorder %v434_v45, %v437_v46 }
 0x203   : > { %vm443_vm6 = vmand %vm441_vm5, %vm1342_vm2 }
 0x204   : > { %v447_v47 = vsel %vm443_vm6, %v431_v29, 0.0 }
 0x205   : > { %v450_v48 = vsel %vm449_vm3, %v447_v47, 0.0 }
 0x224   : > { %451 = vadd.xlane.f32.xlu1 %v450_v48 }
 0x277   : > { %v484_v49 = vpop.permute.xlu1 %483 }
 0x278   : > { %v491_v50 = vsub.f32 %v431_v29, %v484_v49 }
 0x27a   : > { %v493_v51 = vmul.f32 1.442695, %v491_v50 }
 0x27b   : > { %v489_v52 = vpop.permute.xlu1 %488 }
 0x27c   : > { %972 = vpow2.f32 %v493_v51  ;;  %v492_v53 = vsub.f32 %v432_v33, %v489_v52 }
 0x27e   : > { %v495_v54 = vmul.f32 1.442695, %v492_v53 }
 0x27f   : > { %v440_v55 = vpop.permute.xlu1 %439 }
 0x280   : > { %974 = vpow2.f32 %v495_v54  ;;  %vm442_vm7 = vcmp.eq.s32.totalorder %v434_v45, %v440_v55 }
 0x281   : > { %vm444_vm8 = vmand %vm442_vm7, %vm1342_vm2  ;;  %976 = vpow2.f32 %v473_v1 }
 0x282   : > { %v448_v56 = vsel %vm444_vm8, %v432_v33, 0.0  ;;  %978 = vpow2.f32 %v475_v2 }
 0x283   : > { %v453_v57 = vsel %vm449_vm3, %v448_v56, 0.0 }
 0x284   : > { %454 = vadd.xlane.f32.xlu1 %v453_v57 }
 0x286   : > { %v973_v58 = vpop.eup %972 }
 0x287   : > { %v497_v59 = vsel %vm449_vm3, %v973_v58, 0.0 }
 0x288   : > { %498 = vadd.xlane.f32.xlu0 %v497_v59 }
 0x28a   : > { %v975_v60 = vpop.eup %974 }
 0x28b   : > { %v500_v61 = vsel %vm449_vm3, %v975_v60, 0.0  ;;  %v977_v4 = vpop.eup %976 }
 0x28c   : > { %501 = vadd.xlane.f32.xlu1 %v500_v61  ;;  %v479_v10 = vmul.f32 %v977_v4, %v477_v6  ;;  %v979_v11 = vpop.eup %978 }
 0x28d   : > { %v480_v15 = vmul.f32 %v979_v11, %v478_v13 }
 0x2b1   : > { %v452_v63 = vpop.xlane.xlu1 %451 }
 0x2b2   : > { %v456_v0 = vadd.f32 %v452_v63, %v445_v62 }
 0x2b4   : > { %459 = vst.msk [vmem:[#allocation4] sm:$0xff] %vm458_vm4, %v456_v0 }
 0x311   : > { %v455_v5 = vpop.xlane.xlu1 %454 }
 0x312   : > { %v457_v9 = vadd.f32 %v455_v5, %v446_v3 }
 0x314   : > { %460 = vst.msk [vmem:[#allocation4 + $0x8] sm:$0xff] %vm458_vm4, %v457_v9 }
 0x315   : > { %v499_v12 = vpop.xlane.xlu0 %498 }
 0x316   : > { %v503_v14 = vadd.f32 %v499_v12, %v479_v10 }
 0x318   : > { %505 = vst.msk [vmem:[#allocation3] sm:$0xff] %vm458_vm4, %v503_v14 }
 0x319   : > { %v502_v16 = vpop.xlane.xlu1 %501 }
 0x31a   : > { %v504_v17 = vadd.f32 %v502_v16, %v480_v15 }
 0x31c   : > { %506 = vst.msk [vmem:[#allocation3 + $0x8] sm:$0xff] %vm458_vm4, %v504_v17 }
 0x31d PF: > { %p836_p1 = scmp.lt.s32.totalorder %s1117_s20, 2 }
 0x31e   : > { %v513_v18 = vld [vmem:[%s1307_s14] sm:$0xff] (!%p836_p1)  ;;  %v514_v19 = vld [vmem:[%s1307_s14 + $0x8] sm:$0xff] (!%p836_p1)  ;;  %v1138_v20 = vmov (!%p836_p1), 0.0   ;;  %vm1139_vm9 = vmmov (!%p836_p1), 0   ;;  %v515_v22 = vld [vmem:[%s1307_s14 + $0x10] sm:$0xff] (!%p836_p1)  ;;  %v1140_v32 = vmov (!%p836_p1), 0   ;;  %v568_v33 = vlaneseq (!%p836_p1) }
 0x31f   : > { %512 = sbr.rel (%p836_p1) target bundleno = 1483 (0x5cb), region = 56  ;;  %870 = vmatprep.subr.bf16.mxu0 (!%p836_p1), %v1138_v20  ;;  %v522_v21 = vpack.c.bf16 (!%p836_p1), %v514_v19, %v513_v18  ;;  %878 = vmatprep.mubr.msk.bf16.mxu0 (!%p836_p1), %vm1139_vm9, %v1138_v20  ;;  %v516_v23 = vld [vmem:[%s1307_s14 + $0x18] sm:$0xff] (!%p836_p1)  ;;  %v517_v25 = vld [vmem:[%s1307_s14 + $0x20] sm:$0xff] (!%p836_p1)  ;;  %v518_v26 = vld [vmem:[%s1307_s14 + $0x28] sm:$0xff] (!%p836_p1)  ;;  %s837_s7 = sadd.s32 (!%p836_p1), 4294967294, %s1117_s20  ;;  %vm593_vm11 = vcmask (!%p836_p1), 523264  }
 0x320   : > { %v523_v24 = vpack.c.bf16 (!%p836_p1), %v516_v23, %v515_v22  ;;  %v524_v27 = vpack.c.bf16 (!%p836_p1), %v518_v26, %v517_v25  ;;  %v519_v28 = vld [vmem:[%s1307_s14 + $0x30] sm:$0xff] (!%p836_p1)  ;;  %v520_v29 = vld [vmem:[%s1307_s14 + $0x38] sm:$0xff] (!%p836_p1)  ;;  %981 = vset.pattern.permute.xlu0 (!%p836_p1), %v1140_v32  ;;  %980 = vset.pattern.permute.xlu1 (!%p836_p1), %v1140_v32  ;;  %s1380_s26 = sshll.u32 (!%p836_p1), %s837_s7, 6  ;;  %v569_v34 = vand.u32 (!%p836_p1), 127, %v568_v33  ;;  %v605_v44 = vld [vmem:[#allocation2] sm:$0xff] (!%p836_p1)  ;;  %vm602_vm12 = vcmask (!%p836_p1), 7168  }
 0x321   : > { %871 = vmatpush3.bf16.xpose.msra.mxu0 (!%p836_p1), %v522_v21  ;;  %v525_v30 = vpack.c.bf16 (!%p836_p1), %v520_v29, %v519_v28  ;;  %v526_v31 = vld [vmem:[#allocation5] sm:$0xff] (!%p836_p1)  ;;  %s571_s9 = ssub.s32 (!%p836_p1), 64, %s1380_s26  ;;  %v606_v47 = vld [vmem:[#allocation2 + $0x8] sm:$0xff] (!%p836_p1)  ;;  %s576_s10 = sadd.s32 (!%p836_p1), 96, %s1380_s26  ;;  %v589_v6 = vld [vmem:[#allocation4] sm:$0xff] (!%p836_p1) }
 0x322   : > { %872 = vmatprep.subr.bf16.mxu0 (!%p836_p1), %v1138_v20  ;;  %v572_v35 = vstv (!%p836_p1), %s571_s9  ;;  %v577_v52 = vstv (!%p836_p1), %s576_s10  ;;  %v590_v13 = vld [vmem:[#allocation4 + $0x8] sm:$0xff] (!%p836_p1)  ;;  %v621_v16 = vld [vmem:[#allocation3] sm:$0xff] (!%p836_p1) }
 0x323   : > { %vm573_vm10 = vcmp.lt.s32.totalorder (!%p836_p1), %v569_v34, %v572_v35  ;;  %v578_v53 = vadd.s32 (!%p836_p1), %v577_v52, %v569_v34  ;;  %v622_v21 = vld [vmem:[#allocation3 + $0x8] sm:$0xff] (!%p836_p1) }
 0x329   : > { %873 = vmatpush3.bf16.xpose.msra.mxu0 %v523_v24 }
 0x32a   : > { %874 = vmatprep.subr.bf16.mxu0 %v1138_v20 }
 0x331   : > { %875 = vmatpush3.bf16.xpose.msra.mxu0 %v524_v27 }
 0x332   : > { %876 = vmatprep.subr.bf16.mxu0 %v1138_v20 }
 0x339   : > { %877 = vmatpush3.bf16.xpose.msra.mxu0 %v525_v30 }
 0x340   : > { %879 = vmatmul.mubr.bf16.vlgmr.msra.gmra.mrb[0].mxu0 %v526_v31 }
 0x413   : > { %v561_v36 = vpop.f32.mrb[0].mxu0 }
 0x414   : > { %v574_v37 = vsel %vm573_vm10, %v561_v36, -1e+30  ;;  %v880_v38 = vpop.f32.mrb[1].mxu0 }
 0x415   : > { %v564_v39 = vpop.f32.mrb[2].mxu0  ;;  %v607_v40 = vsel %vm593_vm11, %v574_v37, -inf }
 0x416   : > { %v575_v41 = vsel %vm573_vm10, %v564_v39, -1e+30  ;;  %608 = vmax.xlane.f32.xlu0 %v607_v40  ;;  %v881_v42 = vpop.f32.mrb[3].mxu0 }
 0x417   : > { %v610_v43 = vsel %vm593_vm11, %v575_v41, -inf }
 0x41a   : > { %611 = vmax.xlane.f32.xlu0 %v610_v43 }
 0x430   : > { %580 = vperm.xlu0 %981, %v1323_v7  }
 0x4a3   : > { %v609_v45 = vpop.xlane.xlu0 %608 }
 0x4a4   : > { %v613_v46 = vmax.f32 %v605_v44, %v609_v45 }
 0x4a6   : > { %v615_v48 = vsub.f32 %v605_v44, %v613_v46  ;;  %651 = vst.msk [vmem:[#allocation2] sm:$0xff] %vm602_vm12, %v613_v46  ;;  %627 = vperm.xlu1 %980, %v613_v46  }
 0x4a7   : > { %v612_v49 = vpop.xlane.xlu0 %611 }
 0x4a8   : > { %v614_v50 = vmax.f32 %v606_v47, %v612_v49  ;;  %v617_v11 = vmul.f32 1.442695, %v615_v48 }
 0x4aa   : > { %v616_v51 = vsub.f32 %v606_v47, %v614_v50  ;;  %652 = vst.msk [vmem:[#allocation2 + $0x8] sm:$0xff] %vm602_vm12, %v614_v50  ;;  %632 = vperm.xlu1 %980, %v614_v50  }
 0x4ac   : > { %v619_v12 = vmul.f32 1.442695, %v616_v51 }
 0x4ae   : > { %583 = vperm.xlu1 %980, %v1328_v8  }
 0x4af   : > { %v581_v54 = vpop.permute.xlu0 %580 }
 0x4b0   : > { %vm585_vm13 = vcmp.eq.s32.totalorder %v578_v53, %v581_v54 }
 0x4b1   : > { %vm587_vm14 = vmand %vm585_vm13, %vm573_vm10 }
 0x4b2   : > { %v591_v55 = vsel %vm587_vm14, %v574_v37, 0.0 }
 0x4b3   : > { %v594_v56 = vsel %vm593_vm11, %v591_v55, 0.0 }
 0x4d2   : > { %595 = vadd.xlane.f32.xlu1 %v594_v56 }
 0x525   : > { %v628_v57 = vpop.permute.xlu1 %627 }
 0x526   : > { %v635_v58 = vsub.f32 %v574_v37, %v628_v57 }
 0x528   : > { %v637_v59 = vmul.f32 1.442695, %v635_v58 }
 0x529   : > { %v633_v60 = vpop.permute.xlu1 %632 }
 0x52a   : > { %982 = vpow2.f32 %v637_v59  ;;  %v636_v61 = vsub.f32 %v575_v41, %v633_v60 }
 0x52c   : > { %v639_v62 = vmul.f32 1.442695, %v636_v61 }
 0x52d   : > { %v584_v63 = vpop.permute.xlu1 %583 }
 0x52e   : > { %984 = vpow2.f32 %v639_v62  ;;  %vm586_vm15 = vcmp.eq.s32.totalorder %v578_v53, %v584_v63 }
 0x52f   : > { %vm588_vm0 = vmand %vm586_vm15, %vm573_vm10  ;;  %986 = vpow2.f32 %v617_v11 }
 0x530   : > { %v592_v0 = vsel %vm588_vm0, %v575_v41, 0.0  ;;  %988 = vpow2.f32 %v619_v12 }
 0x531   : > { %v597_v1 = vsel %vm593_vm11, %v592_v0, 0.0 }
 0x532   : > { %598 = vadd.xlane.f32.xlu1 %v597_v1 }
 0x534   : > { %v983_v2 = vpop.eup %982 }
 0x535   : > { %v641_v3 = vsel %vm593_vm11, %v983_v2, 0.0 }
 0x536   : > { %642 = vadd.xlane.f32.xlu0 %v641_v3 }
 0x538   : > { %v985_v4 = vpop.eup %984 }
 0x539   : > { %v644_v5 = vsel %vm593_vm11, %v985_v4, 0.0  ;;  %v987_v14 = vpop.eup %986 }
 0x53a   : > { %645 = vadd.xlane.f32.xlu1 %v644_v5  ;;  %v623_v18 = vmul.f32 %v987_v14, %v621_v16  ;;  %v989_v19 = vpop.eup %988 }
 0x53b   : > { %v624_v23 = vmul.f32 %v989_v19, %v622_v21 }
 0x55f   : > { %v596_v9 = vpop.xlane.xlu1 %595 }
 0x560   : > { %v600_v10 = vadd.f32 %v596_v9, %v589_v6 }
 0x562   : > { %603 = vst.msk [vmem:[#allocation4] sm:$0xff] %vm602_vm12, %v600_v10 }
 0x5bf   : > { %v599_v15 = vpop.xlane.xlu1 %598 }
 0x5c0   : > { %v601_v17 = vadd.f32 %v599_v15, %v590_v13 }
 0x5c2   : > { %604 = vst.msk [vmem:[#allocation4 + $0x8] sm:$0xff] %vm602_vm12, %v601_v17 }
 0x5c3   : > { %v643_v20 = vpop.xlane.xlu0 %642 }
 0x5c4   : > { %v647_v22 = vadd.f32 %v643_v20, %v623_v18 }
 0x5c6   : > { %649 = vst.msk [vmem:[#allocation3] sm:$0xff] %vm602_vm12, %v647_v22 }
 0x5c7   : > { %v646_v24 = vpop.xlane.xlu1 %645 }
 0x5c8   : > { %v648_v25 = vadd.f32 %v646_v24, %v624_v23 }
 0x5ca   : > { %650 = vst.msk [vmem:[#allocation3 + $0x8] sm:$0xff] %vm602_vm12, %v648_v25 }
 0x5cb PF: > { %p839_p3 = scmp.ne.s32.totalorder %s1117_s20, 2 }
 0x5cc   : > { %vm657_vm1 = vcmp.ge.s32.totalorder (!%p839_p3), %v1323_v7, 0  ;;  %vm659_vm2 = vcmp.le.s32.totalorder (!%p839_p3), %v1323_v7, 96  ;;  %vm658_vm3 = vcmp.ge.s32.totalorder (!%p839_p3), %v1328_v8, 0  ;;  %vm660_vm4 = vcmp.le.s32.totalorder (!%p839_p3), %v1328_v8, 96  ;;  %v667_v29 = vld [vmem:[#allocation2] sm:$0xff] (!%p839_p3)  ;;  %v668_v32 = vld [vmem:[#allocation2 + $0x8] sm:$0xff] (!%p839_p3) }
 0x5cd   : > { %656 = sbr.rel (%p839_p3) target bundleno = 1510 (0x5e6), region = 60  ;;  %v669_v26 = vld [vmem:[#allocation3] sm:$0xff] (!%p839_p3)  ;;  %vm661_vm5 = vmand (!%p839_p3), %vm657_vm1, %vm659_vm2  ;;  %v677_v33 = vld [vmem:[#allocation4] sm:$0xff] (!%p839_p3)  ;;  %v1141_v37 = vmov (!%p839_p3), 0.0   ;;  %vm683_vm7 = vcmask (!%p839_p3), 7168  }
 0x5ce   : > { %990 = vlog2.f32 (!%p839_p3), %v669_v26  ;;  %vm662_vm6 = vmand (!%p839_p3), %vm658_vm3, %vm660_vm4  ;;  %v678_v36 = vld [vmem:[#allocation4 + $0x8] sm:$0xff] (!%p839_p3)  ;;  %v840_v38 = vsel (!%p839_p3), %vm661_vm5, 1.0, %v1141_v37 }
 0x5cf   : > { %v841_v7 = vsel (!%p839_p3), %vm662_vm6, 1.0, %v1141_v37 }
 0x5d1   : > { %v670_v27 = vld [vmem:[#allocation3 + $0x8] sm:$0xff] (!%p839_p3) }
 0x5d2   : > { %992 = vlog2.f32 (!%p839_p3), %v670_v27 }
 0x5d8   : > { %v991_v28 = vpop.eup %990 }
 0x5d9   : > { %v672_v31 = vmul.f32 0.6931472, %v991_v28 }
 0x5db   : > { %v675_v35 = vadd.f32 %v672_v31, %v667_v29 }
 0x5dc   : > { %v993_v30 = vpop.eup %992 }
 0x5dd   : > { %v674_v34 = vmul.f32 0.6931472, %v993_v30  ;;  %v679_v40 = vsub.f32 %v675_v35, %v677_v33 }
 0x5df   : > { %v676_v39 = vadd.f32 %v674_v34, %v668_v32  ;;  %v681_v42 = vmul.f32 %v840_v38, %v679_v40 }
 0x5e1   : > { %v680_v41 = vsub.f32 %v676_v39, %v678_v36  ;;  %684 = vst.msk [vmem:[%s1440_s4] sm:$0xff] %vm683_vm7, %v681_v42 }
 0x5e3   : > { %v682_v8 = vmul.f32 %v841_v7, %v680_v41 }
 0x5e5   : > { %685 = vst.msk [vmem:[%s1440_s4 + $0x8] sm:$0xff] %vm683_vm7, %v682_v8 }
 0x5e6 PF: > { %s20_s22 = sadd.s32 1, %s1125_s22   ;;  %s1450_s15 = smov %s1101_s16 }
 0x5e7   : > { %p17_p4 = scmp.ge.s32.totalorder %s20_s22, 5   ;;  %s1417_s16 = smov 0  }
 0x5e8   : > { %s1451_s17 = smov %s1109_s18  ;;  %s1452_s18 = smov %s1113_s19 }
 0x5e9   : > { %s1453_s19 = smov %s1224_s30  ;;  %s1454_s20 = smov %s1121_s21 }
 0x5ea   : > { %s1455_s21 = smov %s1457_s24  ;;  %19 = sbr.rel (!%p17_p4) target bundleno = 7 (0x7), region = 111 }
 0x5f1   :  { %708 = vsyncpa [#allocation7], 1 }
 0x5f2   :  { %710 = vsyncpa [#allocation7 + $0x1], 1 }
 0x5f3   :  { %711 = vsyncpa [#allocation9], 1 }
 0x5f4   :  { %713 = vsyncpa [#allocation9 + $0x1], 1 }

</bundles_post_ra>
